<compile_context>
chip_gen: v7x
topology: tpu7x:2x2x1
jax: 0.10.0
libtpu: 0.0.40
codegen_flags: <defaults>
</compile_context>

<pallas_src>
import numpy as np
import jax
import jax.numpy as jnp
from jax import lax
from jax.experimental import pallas as pl
from jax.experimental.pallas import tpu as pltpu

# --- module hyperparameters (Potential_neural_network.__init__) ---
N_EPSILON = 2
N_INTERNAL = 2
N_INPUT = N_EPSILON + N_INTERNAL          # n_input = 4
N_NEURON = [32, 32]                       # hidden widths
N_LAYER = len(N_NEURON)
N_MAX = max(N_NEURON)                     # 32

ACT_ALPHA = 15.0                          # softplus_squared, trainable=False
ACT_BETA = ACT_ALPHA ** 2                 # 225.0
INV_ACT_BETA = 1.0 / ACT_BETA
AUX_ALPHA = 0.1                           # abs_smooth, trainable=False
AUX_BETA = AUX_ALPHA ** 2                 # 0.01
SOFTPLUS_THRESHOLD = 20.0                 # torch F.softplus default threshold

# --- kernel tiling (everything 128-lane aligned) ---
WIDTH = 128                               # lane width of every tile / blob segment
TB = 8                                    # batch rows per grid step (one program)
R = 2 * TB + 1                            # stacked rows: TB primal + TB JVP + 1 shared x=0
X_LANE = N_MAX                            # x occupies lanes [X_LANE, X_LANE + N_INPUT)
HEADER_ROWS = 8                           # bias rows + |wL| row
SEG_ROWS = WIDTH                          # one (128,128) weight block per hidden layer
ROW_WL = N_LAYER                          # header row holding abs_smooth(wL)
BLOB_ROWS = HEADER_ROWS + N_LAYER * SEG_ROWS   # 264


# ----- shared elementwise math (host packing + reference) -----
def _abs_smooth(w):
    # abs_smooth with trainable=False: sqrt(w^2 + alpha^2) - alpha
    return jnp.sqrt(w * w + AUX_BETA) - AUX_ALPHA


def _softplus_beta(z):
    bz = ACT_BETA * z
    return jnp.where(bz > SOFTPLUS_THRESHOLD, z,
                     jnp.log1p(jnp.exp(jnp.minimum(bz, SOFTPLUS_THRESHOLD))) * INV_ACT_BETA)


def _softplus_squared(z):
    s = _softplus_beta(z)
    return s * s


# ----- Pallas kernel (one program = TB batch rows) -----
def _kernel(x_ref, blob_ref, o_ref):
    xz = x_ref[...]                                   # (TB,128): x at lanes [X_LANE, X_LANE+4), rest 0

    # hoisted iota masks (built once per program, reused every layer)
    row = lax.broadcasted_iota(jnp.int32, (R, WIDTH), 0)
    lane = lax.broadcasted_iota(jnp.int32, (R, WIDTH), 1)
    jvp_rows = (row >= TB) & (row < 2 * TB)           # JVP rows: no bias, derivative update
    act_lanes = lane < N_MAX                          # activation lanes (x lanes ride along)

    # stacked working tile A: rows [primal | JVP | x=0], lanes [act | x | zero-pad]
    A = jnp.concatenate([xz, xz, jnp.zeros((1, WIDTH), jnp.float32)], axis=0)   # (R,128)

    for li in range(N_LAYER):
        off = HEADER_ROWS + li * SEG_ROWS
        W = blob_ref[off:off + WIDTH, :]              # (128,128): [|wt| ; w0^T / pt] (abs_smooth pre-applied on host)
        b = blob_ref[li:li + 1, :]                    # (1,128) bias (zeros outside lanes [0, n_i))

        zd = jnp.dot(A, W, preferred_element_type=jnp.float32)   # ONE MXU pass per layer
        z = jnp.where(jvp_rows, zd, zd + b)           # bias on primal + x=0 rows only

        # fused softplus_squared value + derivative: a single exp / log1p per layer
        bz = ACT_BETA * z
        e = jnp.exp(jnp.minimum(bz, SOFTPLUS_THRESHOLD))
        s = jnp.where(bz > SOFTPLUS_THRESHOLD, z, jnp.log1p(e) * INV_ACT_BETA)
        val = s * s                                   # activation value (primal / x=0 rows)

        s0 = s[2 * TB:2 * TB + 1, :]                  # shared x=0 row (1,128)
        e0 = e[2 * TB:2 * TB + 1, :]
        bz0 = bz[2 * TB:2 * TB + 1, :]
        sig0 = jnp.where(bz0 > SOFTPLUS_THRESHOLD, 1.0, e0 / (1.0 + e0))
        jvp = (2.0 * s0 * sig0) * z                   # d/dz softplus_squared(z0) * dz (JVP rows)

        upd = jnp.where(jvp_rows, jvp, val)
        A = jnp.where(act_lanes, upd, A)              # x lanes preserved; no concats in the loop

    # final layer: bL and x@pL cancel exactly in f(x) - <grad f(0), x> - f(0)
    wl = blob_ref[ROW_WL:ROW_WL + 1, :]               # (1,128) abs_smooth(wL), zeros outside [0, n_last)
    r = jnp.sum(A * wl, axis=1, keepdims=True)        # (R,1): <a_b,wl>, <v_b,wl>, <a0,wl>

    # combine rows into a lane-dense output row: out[b] = r[b] - r[TB+b] - r[2*TB]
    valid = lane < TB
    comb = (jnp.where((row == lane) & valid, 1.0, 0.0)
            - jnp.where((row == lane + TB) & valid, 1.0, 0.0)
            - jnp.where((row == 2 * TB) & valid, 1.0, 0.0))
    o_ref[...] = jnp.sum(comb * r, axis=0, keepdims=True)        # (1,128)


@jax.jit
def potential_forward(x, blob):
    """Batched potential: x (B, N_INPUT) -> (B, 1); each row follows the module's batch-1 forward."""
    B = x.shape[0]
    assert B % TB == 0, "batch must be a multiple of TB"
    G = B // TB
    # place x at lanes [X_LANE, X_LANE+N_INPUT) of a clean (8,128)-tiled input
    x_wide = jnp.zeros((B, WIDTH), jnp.float32).at[:, X_LANE:X_LANE + N_INPUT].set(
        x.astype(jnp.float32))
    out = pl.pallas_call(
        _kernel,
        out_shape=jax.ShapeDtypeStruct((1, G * WIDTH), jnp.float32),
        grid=(G,),
        in_specs=[pl.BlockSpec((TB, WIDTH), lambda g: (g, 0)),
                  pl.BlockSpec((BLOB_ROWS, WIDTH), lambda g: (0, 0))],   # blob resident, DMA'd once
        out_specs=pl.BlockSpec((1, WIDTH), lambda g: (0, g)),            # lane-dense (1,128) per program
        compiler_params=pltpu.CompilerParams(dimension_semantics=("parallel",)),
    )(x_wide, blob)
    # each (1,128) output block holds its TB results in lanes [0, TB)
    return out.reshape(G, WIDTH)[:, :TB].reshape(B, 1)


# ----- host-side parameter packing (run once, reuse across calls) -----
def pack_params(p):
    """Pack every needed parameter into one (BLOB_ROWS, 128) f32 blob.

    abs_smooth is pre-applied on the host; the final bias bL and the final passthrough
    pL are intentionally NOT packed because they cancel exactly in the potential."""
    blob = jnp.zeros((BLOB_ROWS, WIDTH), jnp.float32)
    # header: per-layer biases + |wL|
    blob = blob.at[0, 0:N_NEURON[0]].set(p["b0"][0])
    for i in range(1, N_LAYER):
        blob = blob.at[i, 0:N_NEURON[i]].set(p["b"][i - 1][0])
    blob = blob.at[ROW_WL, 0:N_NEURON[-1]].set(_abs_smooth(p["wLt"][:, 0]))
    # layer 0: x-projection rows sit at the x-lane row positions of the (128,128) block
    off0 = HEADER_ROWS
    blob = blob.at[off0 + X_LANE:off0 + X_LANE + N_INPUT, 0:N_NEURON[0]].set(p["w0t"])
    # hidden layers i>=1: |wt| on rows [0, n_prev), passthrough pt on rows [X_LANE, X_LANE+4)
    for i in range(1, N_LAYER):
        off = HEADER_ROWS + i * SEG_ROWS
        blob = blob.at[off:off + N_NEURON[i - 1], 0:N_NEURON[i]].set(_abs_smooth(p["wt"][i - 1]))
        blob = blob.at[off + X_LANE:off + X_LANE + N_INPUT, 0:N_NEURON[i]].set(p["pt"][i - 1])
    return blob


# ----- deterministic parameter init (shapes follow the torch module __init__) -----
def init_params(key):
    keys = iter(jax.random.split(key, 2 + 3 * (N_LAYER - 1) + 3))
    p = {}
    bound0 = 1.0 / np.sqrt(N_INPUT)
    # layer[0]: torch.nn.Linear(n_input, n_neuron[0], bias=True)   (stored pre-transposed)
    p["w0t"] = jax.random.uniform(next(keys), (N_INPUT, N_NEURON[0]), jnp.float32, -bound0, bound0)
    p["b0"] = jax.random.uniform(next(keys), (1, N_NEURON[0]), jnp.float32, -bound0, bound0)
    p["wt"], p["b"], p["pt"] = [], [], []
    for i in range(1, N_LAYER):
        bnd = 1.0 / np.sqrt(N_NEURON[i - 1])
        # layer[i]: LinearPosWeights(n_neuron[i-1], n_neuron[i], bias=True)
        p["wt"].append(jax.random.uniform(next(keys), (N_NEURON[i - 1], N_NEURON[i]), jnp.float32, -bnd, bnd))
        p["b"].append(jax.random.uniform(next(keys), (1, N_NEURON[i]), jnp.float32, -bnd, bnd))
        # passthroughlayer[i]: torch.nn.Linear(n_input, n_neuron[i], bias=False)
        p["pt"].append(jax.random.uniform(next(keys), (N_INPUT, N_NEURON[i]), jnp.float32, -bound0, bound0))
    bndL = 1.0 / np.sqrt(N_NEURON[-1])
    # layer[n_layer]: LinearPosWeights(n_neuron[-1], 1, bias=True)
    p["wLt"] = jax.random.uniform(next(keys), (N_NEURON[-1], 1), jnp.float32, -bndL, bndL)
    p["bL"] = jax.random.uniform(next(keys), (1, 1), jnp.float32, -bndL, bndL)
    # passthroughlayer[n_layer]: torch.nn.Linear(n_input, 1, bias=False)  (passthrough='linear')
    p["pLt"] = jax.random.uniform(next(keys), (N_INPUT, 1), jnp.float32, -bound0, bound0)
    return p


# ----- pure-JAX reference (mirrors torch forward, incl. autograd.grad via jax.grad) -----
def forward_convex_ref(x, p):
    a = _softplus_squared(x @ p["w0t"] + p["b0"])
    for i in range(1, N_LAYER):
        a = _softplus_squared(a @ _abs_smooth(p["wt"][i - 1]) + p["b"][i - 1] + x @ p["pt"][i - 1])
    return a @ _abs_smooth(p["wLt"]) + p["bL"] + x @ p["pLt"]


def potential_ref(x, p):
    # exact torch forward semantics at batch 1
    zeros = jnp.zeros_like(x)
    fx = forward_convex_ref(x, p)
    f0 = forward_convex_ref(zeros, p)
    grad0 = jax.grad(lambda xv: forward_convex_ref(xv, p)[0, 0])(zeros)   # (1, n_in)
    return fx - jnp.dot(grad0[0], x[0]).reshape(1, 1) - f0


if __name__ == "__main__":
    key = jax.random.PRNGKey(0)
    kx, kp = jax.random.split(key)
    B = 16                                               # 2 grid steps of TB=8 rows
    x = jax.random.normal(kx, (B, N_INPUT), jnp.float32)
    params = init_params(kp)

    blob = jax.block_until_ready(pack_params(params))    # built once; reusable across calls
    out = jax.block_until_ready(potential_forward(x, blob))

    # reference: the torch module forward is defined at batch 1 -> apply it per row
    ref = jnp.concatenate([potential_ref(x[b:b + 1], params) for b in range(B)], axis=0)  # (B,1)
    assert out.shape == (B, 1) and out.dtype == jnp.float32
    np.testing.assert_allclose(np.asarray(out), np.asarray(ref), rtol=1e-4, atol=5e-5)
    print("KERNEL_OK")
</pallas_src>

<mosaic_0001>
module attributes {stable_mosaic.version = 11 : i64} {
  func.func @_kernel(%arg0: i32, %arg1: memref<8x128xf32, #tpu.memory_space<vmem>>, %arg2: memref<264x128xf32, #tpu.memory_space<vmem>>, %arg3: memref<1x128xf32, #tpu.memory_space<vmem>>) attributes {dimension_semantics = [#tpu.dimension_semantics<parallel>], iteration_bounds = array<i64: 2>, scalar_prefetch = 0 : i64, scratch_operands = 0 : i64, tpu.core_type = #tpu.core_type<tc>, window_params = [{transform_indices = @transform_0, window_bounds = array<i64: 8, 128>}, {pipeline_mode = #tpu.pipeline_mode<synchronous>, transform_indices = @transform_1, window_bounds = array<i64: 264, 128>}, {transform_indices = @transform_2, window_bounds = array<i64: 1, 128>}]} {
    %c0 = arith.constant 0 : index
    %c0_0 = arith.constant 0 : index
    %0 = vector.load %arg1[%c0, %c0_0] : memref<8x128xf32, #tpu.memory_space<vmem>>, vector<8x128xf32>
    %1 = tpu.iota {dimensions = array<i32: 0>} : vector<17x128xi32>
    %2 = tpu.iota {dimensions = array<i32: 1>} : vector<17x128xi32>
    %c8_i32 = arith.constant 8 : i32
    %3 = vector.broadcast %c8_i32 : i32 to vector<17x128xi32>
    %4 = arith.cmpi sge, %1, %3 : vector<17x128xi32>
    %c16_i32 = arith.constant 16 : i32
    %5 = vector.broadcast %c16_i32 : i32 to vector<17x128xi32>
    %6 = arith.cmpi slt, %1, %5 : vector<17x128xi32>
    %7 = arith.andi %4, %6 : vector<17x128xi1>
    %c32_i32 = arith.constant 32 : i32
    %8 = vector.broadcast %c32_i32 : i32 to vector<17x128xi32>
    %9 = arith.cmpi slt, %2, %8 : vector<17x128xi32>
    %cst = arith.constant 0.000000e+00 : f32
    %10 = vector.broadcast %cst : f32 to vector<1x128xf32>
    %11 = tpu.concatenate %0, %0, %10 in 0 : vector<8x128xf32>, vector<8x128xf32>, vector<1x128xf32> -> vector<17x128xf32>
    %c8 = arith.constant 8 : index
    %c0_1 = arith.constant 0 : index
    %12 = vector.load %arg2[%c8, %c0_1] : memref<264x128xf32, #tpu.memory_space<vmem>>, vector<128x128xf32>
    %c0_2 = arith.constant 0 : index
    %c0_3 = arith.constant 0 : index
    %13 = vector.load %arg2[%c0_2, %c0_3] : memref<264x128xf32, #tpu.memory_space<vmem>>, vector<1x128xf32>
    %cst_4 = arith.constant dense<0.000000e+00> : vector<17x128xf32>
    %14 = tpu.matmul %11, %12, %cst_4 {dimension_numbers = #tpu.dot_dimension_numbers<[1], [0], [0], [1], [0, 0, 1, 1], [], []>} : vector<17x128xf32>, vector<128x128xf32>, vector<17x128xf32> -> vector<17x128xf32>
    %15 = vector.broadcast %13 : vector<1x128xf32> to vector<17x128xf32>
    %16 = arith.addf %14, %15 : vector<17x128xf32>
    %17 = arith.select %7, %14, %16 : vector<17x128xi1>, vector<17x128xf32>
    %cst_5 = arith.constant 2.250000e+02 : f32
    %18 = vector.broadcast %cst_5 : f32 to vector<17x128xf32>
    %19 = arith.mulf %18, %17 : vector<17x128xf32>
    %cst_6 = arith.constant 2.000000e+01 : f32
    %20 = vector.broadcast %cst_6 : f32 to vector<17x128xf32>
    %21 = arith.minimumf %19, %20 : vector<17x128xf32>
    %22 = math.exp %21 : vector<17x128xf32>
    %cst_7 = arith.constant 2.000000e+01 : f32
    %23 = vector.broadcast %cst_7 : f32 to vector<17x128xf32>
    %24 = arith.cmpf ogt, %19, %23 : vector<17x128xf32>
    %25 = math.log1p %22 : vector<17x128xf32>
    %cst_8 = arith.constant 0.00444444455 : f32
    %26 = vector.broadcast %cst_8 : f32 to vector<17x128xf32>
    %27 = arith.mulf %25, %26 : vector<17x128xf32>
    %28 = arith.select %24, %17, %27 : vector<17x128xi1>, vector<17x128xf32>
    %29 = arith.mulf %28, %28 : vector<17x128xf32>
    %30 = vector.extract_strided_slice %28 {offsets = [16, 0], sizes = [1, 128], strides = [1, 1]} : vector<17x128xf32> to vector<1x128xf32>
    %31 = vector.extract_strided_slice %22 {offsets = [16, 0], sizes = [1, 128], strides = [1, 1]} : vector<17x128xf32> to vector<1x128xf32>
    %32 = vector.extract_strided_slice %19 {offsets = [16, 0], sizes = [1, 128], strides = [1, 1]} : vector<17x128xf32> to vector<1x128xf32>
    %cst_9 = arith.constant 2.000000e+01 : f32
    %33 = vector.broadcast %cst_9 : f32 to vector<1x128xf32>
    %34 = arith.cmpf ogt, %32, %33 : vector<1x128xf32>
    %cst_10 = arith.constant 1.000000e+00 : f32
    %35 = vector.broadcast %cst_10 : f32 to vector<1x128xf32>
    %36 = arith.addf %35, %31 : vector<1x128xf32>
    %37 = arith.divf %31, %36 : vector<1x128xf32>
    %cst_11 = arith.constant 1.000000e+00 : f32
    %38 = vector.broadcast %cst_11 : f32 to vector<1x128xf32>
    %39 = arith.select %34, %38, %37 : vector<1x128xi1>, vector<1x128xf32>
    %cst_12 = arith.constant 2.000000e+00 : f32
    %40 = vector.broadcast %cst_12 : f32 to vector<1x128xf32>
    %41 = arith.mulf %40, %30 : vector<1x128xf32>
    %42 = arith.mulf %41, %39 : vector<1x128xf32>
    %43 = vector.broadcast %42 : vector<1x128xf32> to vector<17x128xf32>
    %44 = arith.mulf %43, %17 : vector<17x128xf32>
    %45 = arith.select %7, %44, %29 : vector<17x128xi1>, vector<17x128xf32>
    %46 = arith.select %9, %45, %11 : vector<17x128xi1>, vector<17x128xf32>
    %c136 = arith.constant 136 : index
    %c0_13 = arith.constant 0 : index
    %47 = vector.load %arg2[%c136, %c0_13] : memref<264x128xf32, #tpu.memory_space<vmem>>, vector<128x128xf32>
    %c1 = arith.constant 1 : index
    %c0_14 = arith.constant 0 : index
    %48 = vector.load %arg2[%c1, %c0_14] : memref<264x128xf32, #tpu.memory_space<vmem>>, vector<1x128xf32>
    %cst_15 = arith.constant dense<0.000000e+00> : vector<17x128xf32>
    %49 = tpu.matmul %46, %47, %cst_15 {dimension_numbers = #tpu.dot_dimension_numbers<[1], [0], [0], [1], [0, 0, 1, 1], [], []>} : vector<17x128xf32>, vector<128x128xf32>, vector<17x128xf32> -> vector<17x128xf32>
    %50 = vector.broadcast %48 : vector<1x128xf32> to vector<17x128xf32>
    %51 = arith.addf %49, %50 : vector<17x128xf32>
    %52 = arith.select %7, %49, %51 : vector<17x128xi1>, vector<17x128xf32>
    %cst_16 = arith.constant 2.250000e+02 : f32
    %53 = vector.broadcast %cst_16 : f32 to vector<17x128xf32>
    %54 = arith.mulf %53, %52 : vector<17x128xf32>
    %cst_17 = arith.constant 2.000000e+01 : f32
    %55 = vector.broadcast %cst_17 : f32 to vector<17x128xf32>
    %56 = arith.minimumf %54, %55 : vector<17x128xf32>
    %57 = math.exp %56 : vector<17x128xf32>
    %cst_18 = arith.constant 2.000000e+01 : f32
    %58 = vector.broadcast %cst_18 : f32 to vector<17x128xf32>
    %59 = arith.cmpf ogt, %54, %58 : vector<17x128xf32>
    %60 = math.log1p %57 : vector<17x128xf32>
    %cst_19 = arith.constant 0.00444444455 : f32
    %61 = vector.broadcast %cst_19 : f32 to vector<17x128xf32>
    %62 = arith.mulf %60, %61 : vector<17x128xf32>
    %63 = arith.select %59, %52, %62 : vector<17x128xi1>, vector<17x128xf32>
    %64 = arith.mulf %63, %63 : vector<17x128xf32>
    %65 = vector.extract_strided_slice %63 {offsets = [16, 0], sizes = [1, 128], strides = [1, 1]} : vector<17x128xf32> to vector<1x128xf32>
    %66 = vector.extract_strided_slice %57 {offsets = [16, 0], sizes = [1, 128], strides = [1, 1]} : vector<17x128xf32> to vector<1x128xf32>
    %67 = vector.extract_strided_slice %54 {offsets = [16, 0], sizes = [1, 128], strides = [1, 1]} : vector<17x128xf32> to vector<1x128xf32>
    %cst_20 = arith.constant 2.000000e+01 : f32
    %68 = vector.broadcast %cst_20 : f32 to vector<1x128xf32>
    %69 = arith.cmpf ogt, %67, %68 : vector<1x128xf32>
    %cst_21 = arith.constant 1.000000e+00 : f32
    %70 = vector.broadcast %cst_21 : f32 to vector<1x128xf32>
    %71 = arith.addf %70, %66 : vector<1x128xf32>
    %72 = arith.divf %66, %71 : vector<1x128xf32>
    %cst_22 = arith.constant 1.000000e+00 : f32
    %73 = vector.broadcast %cst_22 : f32 to vector<1x128xf32>
    %74 = arith.select %69, %73, %72 : vector<1x128xi1>, vector<1x128xf32>
    %cst_23 = arith.constant 2.000000e+00 : f32
    %75 = vector.broadcast %cst_23 : f32 to vector<1x128xf32>
    %76 = arith.mulf %75, %65 : vector<1x128xf32>
    %77 = arith.mulf %76, %74 : vector<1x128xf32>
    %78 = vector.broadcast %77 : vector<1x128xf32> to vector<17x128xf32>
    %79 = arith.mulf %78, %52 : vector<17x128xf32>
    %80 = arith.select %7, %79, %64 : vector<17x128xi1>, vector<17x128xf32>
    %81 = arith.select %9, %80, %46 : vector<17x128xi1>, vector<17x128xf32>
    %c2 = arith.constant 2 : index
    %c0_24 = arith.constant 0 : index
    %82 = vector.load %arg2[%c2, %c0_24] : memref<264x128xf32, #tpu.memory_space<vmem>>, vector<1x128xf32>
    %83 = vector.broadcast %82 : vector<1x128xf32> to vector<17x128xf32>
    %84 = arith.mulf %81, %83 : vector<17x128xf32>
    %cst_25 = arith.constant dense<0.000000e+00> : vector<17xf32>
    %85 = vector.multi_reduction <add>, %84, %cst_25 [1] : vector<17x128xf32> to vector<17xf32>
    %86 = vector.shape_cast %85 : vector<17xf32> to vector<17x1xf32>
    %c8_i32_26 = arith.constant 8 : i32
    %87 = vector.broadcast %c8_i32_26 : i32 to vector<17x128xi32>
    %88 = arith.cmpi slt, %2, %87 : vector<17x128xi32>
    %89 = arith.cmpi eq, %1, %2 : vector<17x128xi32>
    %90 = arith.andi %89, %88 : vector<17x128xi1>
    %cst_27 = arith.constant 1.000000e+00 : f32
    %cst_28 = arith.constant 0.000000e+00 : f32
    %91 = vector.broadcast %cst_27 : f32 to vector<17x128xf32>
    %92 = vector.broadcast %cst_28 : f32 to vector<17x128xf32>
    %93 = arith.select %90, %91, %92 : vector<17x128xi1>, vector<17x128xf32>
    %c8_i32_29 = arith.constant 8 : i32
    %94 = vector.broadcast %c8_i32_29 : i32 to vector<17x128xi32>
    %95 = arith.addi %2, %94 : vector<17x128xi32>
    %96 = arith.cmpi eq, %1, %95 : vector<17x128xi32>
    %97 = arith.andi %96, %88 : vector<17x128xi1>
    %cst_30 = arith.constant 1.000000e+00 : f32
    %cst_31 = arith.constant 0.000000e+00 : f32
    %98 = vector.broadcast %cst_30 : f32 to vector<17x128xf32>
    %99 = vector.broadcast %cst_31 : f32 to vector<17x128xf32>
    %100 = arith.select %97, %98, %99 : vector<17x128xi1>, vector<17x128xf32>
    %101 = arith.subf %93, %100 : vector<17x128xf32>
    %c16_i32_32 = arith.constant 16 : i32
    %102 = vector.broadcast %c16_i32_32 : i32 to vector<17x128xi32>
    %103 = arith.cmpi eq, %1, %102 : vector<17x128xi32>
    %104 = arith.andi %103, %88 : vector<17x128xi1>
    %cst_33 = arith.constant 1.000000e+00 : f32
    %cst_34 = arith.constant 0.000000e+00 : f32
    %105 = vector.broadcast %cst_33 : f32 to vector<17x128xf32>
    %106 = vector.broadcast %cst_34 : f32 to vector<17x128xf32>
    %107 = arith.select %104, %105, %106 : vector<17x128xi1>, vector<17x128xf32>
    %108 = arith.subf %101, %107 : vector<17x128xf32>
    %109 = vector.broadcast %86 : vector<17x1xf32> to vector<17x128xf32>
    %110 = arith.mulf %108, %109 : vector<17x128xf32>
    %cst_35 = arith.constant dense<0.000000e+00> : vector<128xf32>
    %111 = vector.multi_reduction <add>, %110, %cst_35 [0] : vector<17x128xf32> to vector<128xf32>
    %112 = vector.shape_cast %111 : vector<128xf32> to vector<1x128xf32>
    %c0_36 = arith.constant 0 : index
    %c0_37 = arith.constant 0 : index
    %113 = vector.load %arg3[%c0_36, %c0_37] : memref<1x128xf32, #tpu.memory_space<vmem>>, vector<1x128xf32>
    tpu.vector_store %arg3[%c0_36, %c0_37], %112 {strides = array<i32>} : memref<1x128xf32, #tpu.memory_space<vmem>>, vector<1x128xf32>,
    return
  }
  func.func @transform_0(%arg0: i32) -> (i32, i32) {
    %c0_i32 = arith.constant 0 : i32
    %c0_i32_0 = arith.constant 0 : i32
    return %arg0, %c0_i32 : i32, i32
  }
  func.func @transform_1(%arg0: i32) -> (i32, i32) {
    %c0_i32 = arith.constant 0 : i32
    %c0_i32_0 = arith.constant 0 : i32
    %c0_i32_1 = arith.constant 0 : i32
    return %c0_i32, %c0_i32_0 : i32, i32
  }
  func.func @transform_2(%arg0: i32) -> (i32, i32) {
    %c0_i32 = arith.constant 0 : i32
    %c0_i32_0 = arith.constant 0 : i32
    return %c0_i32, %arg0 : i32, i32
  }
}

</mosaic_0001>

<bundles_post_ra>
// kernel: potential_forward.1
= control target key start
LH: loop header
LB: loop body
LE: loop exit
PB: predicated region body
PF: predicated region fallthrough
CT: control target
= control target key end

     0   :  { %7 = vsyncpa [#allocation3], 0  ;;  %s933_s9 = smov 0   ;;  %s1080_s0 = inlined_call_operand.vmem [shape: f32[16,128], index: 0, kind: input, shape index: {}]   ;;  %s1081_s1 = inlined_call_operand.hbm [shape: f32[264,128], index: 1, kind: input, shape index: {}]   ;;  %s1082_s2 = inlined_call_operand.vmem [shape: f32[1,256], index: 2, kind: output, shape index: {}]  }
   0x1 LB: > { %s939_s10 = sadd.s32 4294967295, %s910_s9   ;;  %p648_p0 = scmp.ge.s32.totalorder %s910_s9, 1  ;;  %s910_s9 = sphi %s933_s9, %s13_s9  }
   0x2   : > { %p91_p1 = scmp.lt.s32.totalorder %s910_s9, 3  ;;  %s912_s11 = smov [#allocation2]  }
   0x3   : > { %s103_s12 = sshll.u32 %s912_s11, 4  ;;  %p1083_p3 = scmp.eq.s32.totalorder %s939_s10, 0  ;;  %s104_s12 = int_to_ptr.vmem [resolvable:$true] %s103_s12 }
   0x4   : > { %p943_p2 = pnand %p648_p0, %p91_p1  ;;  %s872_s17 = scalar_lea.hbm %s1081_s1, 4224 }
   0x5   : > { %p873_p6 = scmp.ne.s32.totalorder %s1081_s1, %s872_s17  ;;  %p879_p10 = scmp.lt.u32.totalorder %s872_s17, %s1081_s1 }
   0x6   : > { %s1085_s13 = scalar_select %p943_p2, 1, 0 }
   0x7   : > { %p832_p4 = pneg %p943_p2 }
   0x9   : > { %p952_p5 = pnand %p1083_p3, %p832_p4 }
   0xb   : > { %p874_p7 = pneg %p952_p5 }
   0xd   : > { %p875_p8 = pnand %p874_p7, %p873_p6 }
   0xf   : > { %p876_p9 = pneg %p875_p8 }
  0x11   : > { %p881_p11 = pnand %p879_p10, %p876_p9 }
  0x13   : > { %884 = shalt.err (!%p881_p11)
}
  0x14   : > { %s885_s22 = scalar_lea.vmem %s104_s12, 4224  ;;  %p893_p1 = scmp.lt.s32.totalorder %s104_s12, %s104_s12 }
  0x15   : > { %p886_p12 = scmp.ne.s32.totalorder %s104_s12, %s885_s22  ;;  %p894_p4 = scmp.lt.s32.totalorder %s885_s22, %s885_s22 }
  0x17   : > { %p888_p13 = pnand %p886_p12, %p874_p7  ;;  %p895_p3 = por %p894_p4, %p893_p1 }
  0x19   : > { %p889_p0 = pneg %p888_p13 }
  0x1b   : > { %p896_p2 = pnand %p895_p3, %p889_p0 }
  0x1d   : > { %899 = shalt.err (!%p896_p2)
}
  0x1e   : > { %s913_s23 = smov 128   ;;  %s914_s24 = smov 8  }
  0x1f   : > { %835 = dma.hbm_to_vmem [thread:$0]  (!%p952_p5), %s1081_s1, 4224, %s104_s12, [#allocation3], %s913_s23, %s913_s23, %s914_s24  }
  0x20   : > { %p1087_p6 = scmp.ne.s32.totalorder %s1085_s13, 0 }
  0x21   : > { %p1088_p8 = scmp.eq.s32.totalorder (!%p1087_p6), %s939_s10, 0 }
  0x22   : > { %126 = sbr.rel (%p1087_p6) target bundleno = 769 (0x301), region = 28 }
  0x29   : > { %905 = dma.done.wait (%p1088_p8), [#allocation3], 4224   ;;  %p1089_p7 = pmov %p1088_p8 }
  0x2a   : > { %v915_v0 = vmov 0.0|0.0   ;;  %vm916_vm0 = vmmov 0   ;;  %v917_v1 = vmov 0.0   ;;  %v169_v2 = vld [vmem:[#allocation2 + $0x8] sm:$0xff]  ;;  %v170_v3 = vld [vmem:[#allocation2 + $0x10] sm:$0xff]  ;;  %v171_v4 = vld [vmem:[#allocation2 + $0x18] sm:$0xff] }
  0x2b   : > { %907 = vsyncadd (%p1089_p7), [#allocation3], 4294963072  ;;  %780 = vmatprep.subr.bf16.mxu0 %v915_v0  ;;  %730 = vmatprep.mubr.msk.f32.mxu0 %vm916_vm0, %v917_v1  ;;  %v781_v5 = vpack.c.bf16 %v170_v3, %v169_v2  ;;  %v172_v6 = vld [vmem:[#allocation2 + $0x20] sm:$0xff]  ;;  %v173_v8 = vld [vmem:[#allocation2 + $0x28] sm:$0xff]  ;;  %p145_p2 = scmp.lt.s32.totalorder %s939_s10, 1  ;;  %vm535_vm10 = vcmask 1040384  }
  0x2c   : > { %804 = vmatprep.subr.bf16.mxu1 %v915_v0  ;;  %771 = vmatprep.mubr.msk.f32.mxu1 %vm916_vm0, %v917_v1  ;;  %v784_v7 = vpack.c.bf16 %v172_v6, %v171_v4  ;;  %v174_v9 = vld [vmem:[#allocation2 + $0x30] sm:$0xff]  ;;  %v175_v11 = vld [vmem:[#allocation2 + $0x38] sm:$0xff]  ;;  %v176_v12 = vld [vmem:[#allocation2 + $0x40] sm:$0xff] }
  0x2d   : > { %782 = vmatpush3.bf16.msra.mxu0 %v781_v5  ;;  %v787_v10 = vpack.c.bf16 %v174_v9, %v173_v8  ;;  %v790_v13 = vpack.c.bf16 %v176_v12, %v175_v11  ;;  %v177_v14 = vld [vmem:[#allocation2 + $0x48] sm:$0xff]  ;;  %v178_v15 = vld [vmem:[#allocation2 + $0x50] sm:$0xff]  ;;  %v179_v17 = vld [vmem:[#allocation2 + $0x58] sm:$0xff]  ;;  %s1091_s10 = smov (!%p145_p2, %s939_s10), 1 }
  0x2e   : > { %783 = vmatprep.subr.bf16.mxu0 %v915_v0  ;;  %v793_v16 = vpack.c.bf16 %v178_v15, %v177_v14  ;;  %v180_v18 = vld [vmem:[#allocation2 + $0x60] sm:$0xff]  ;;  %v181_v20 = vld [vmem:[#allocation2 + $0x68] sm:$0xff]  ;;  %v182_v21 = vld [vmem:[#allocation2 + $0x70] sm:$0xff]  ;;  %s653_s27 = sshll.u32 %s1091_s10, 3  ;;  %s151_s5 = scalar_lea.vmem %s1082_s2, %s1091_s10 }
  0x2f   : > { %v796_v19 = vpack.c.bf16 %v180_v18, %v179_v17  ;;  %v799_v22 = vpack.c.bf16 %v182_v21, %v181_v20  ;;  %v183_v23 = vld [vmem:[#allocation2 + $0x78] sm:$0xff]  ;;  %v184_v24 = vld [vmem:[#allocation2 + $0x80] sm:$0xff]  ;;  %s148_s30 = scalar_lea.vmem %s1080_s0, %s653_s27  ;;  %v346_v27 = vld [vmem:[#allocation2 + $0x88] sm:$0xff] }
  0x30   : > { %v802_v25 = vpack.c.bf16 %v184_v24, %v183_v23  ;;  %v999_v26 = vld [vmem:[%s148_s30] sm:$0xff]  ;;  %v347_v28 = vld [vmem:[#allocation2 + $0x90] sm:$0xff]  ;;  %v348_v30 = vld [vmem:[#allocation2 + $0x98] sm:$0xff] }
  0x31   : > { %785 = vmatpush3.bf16.msra.mxu0 %v784_v7  ;;  %v805_v29 = vpack.c.bf16 %v347_v28, %v346_v27  ;;  %v349_v31 = vld [vmem:[#allocation2 + $0xa0] sm:$0xff]  ;;  %v350_v33 = vld [vmem:[#allocation2 + $0xa8] sm:$0xff]  ;;  %v351_v34 = vld [vmem:[#allocation2 + $0xb0] sm:$0xff] }
  0x32   : > { %786 = vmatprep.subr.bf16.mxu0 %v915_v0  ;;  %v808_v32 = vpack.c.bf16 %v349_v31, %v348_v30  ;;  %v811_v35 = vpack.c.bf16 %v351_v34, %v350_v33  ;;  %v352_v36 = vld [vmem:[#allocation2 + $0xb8] sm:$0xff]  ;;  %v353_v37 = vld [vmem:[#allocation2 + $0xc0] sm:$0xff]  ;;  %v354_v39 = vld [vmem:[#allocation2 + $0xc8] sm:$0xff] }
  0x33   : > { %806 = vmatpush3.bf16.msra.mxu1 %v805_v29  ;;  %v814_v38 = vpack.c.bf16 %v353_v37, %v352_v36  ;;  %v355_v40 = vld [vmem:[#allocation2 + $0xd0] sm:$0xff]  ;;  %v356_v42 = vld [vmem:[#allocation2 + $0xd8] sm:$0xff]  ;;  %v357_v43 = vld [vmem:[#allocation2 + $0xe0] sm:$0xff] }
  0x34   : > { %807 = vmatprep.subr.bf16.mxu1 %v915_v0  ;;  %v817_v41 = vpack.c.bf16 %v355_v40, %v354_v39  ;;  %v820_v44 = vpack.c.bf16 %v357_v43, %v356_v42  ;;  %v358_v45 = vld [vmem:[#allocation2 + $0xe8] sm:$0xff]  ;;  %v359_v46 = vld [vmem:[#allocation2 + $0xf0] sm:$0xff]  ;;  %v360_v48 = vld [vmem:[#allocation2 + $0xf8] sm:$0xff] }
  0x35   : > { %788 = vmatpush3.bf16.msra.mxu0 %v787_v10  ;;  %v823_v47 = vpack.c.bf16 %v359_v46, %v358_v45  ;;  %v361_v49 = vld [vmem:[#allocation2 + $0x100] sm:$0xff]  ;;  %v153_v10 = vlaneseq }
  0x36   : > { %789 = vmatprep.subr.bf16.mxu0 %v915_v0  ;;  %v826_v50 = vpack.c.bf16 %v361_v49, %v360_v48  ;;  %v654_v51 = vld [vmem:[#allocation2] ss:$0 sm:$0xff] }
  0x37   : > { %809 = vmatpush3.bf16.msra.mxu1 %v808_v32  ;;  %v1015_v15 = vand.u32 127, %v153_v10  ;;  %v1023_v29 = vshrl.u32 %v153_v10, 7 }
  0x38   : > { %810 = vmatprep.subr.bf16.mxu1 %v915_v0 }
  0x39   : > { %791 = vmatpush3.bf16.msra.mxu0 %v790_v13  ;;  %vm168_vm3 = vcmp.lt.s32.totalorder %v1015_v15, 32  ;;  %v335_v34 = vsub.s32 0, %v1023_v29  ;;  %vm539_vm13 = vcmp.lt.s32.totalorder %v1015_v15, 8 }
  0x3a   : > { %792 = vmatprep.subr.bf16.mxu0 %v915_v0 }
  0x3b   : > { %812 = vmatpush3.bf16.msra.mxu1 %v811_v35 }
  0x3c   : > { %813 = vmatprep.subr.bf16.mxu1 %v915_v0 }
  0x3d   : > { %794 = vmatpush3.bf16.msra.mxu0 %v793_v16 }
  0x3e   : > { %795 = vmatprep.subr.bf16.mxu0 %v915_v0 }
  0x3f   : > { %815 = vmatpush3.bf16.msra.mxu1 %v814_v38 }
  0x40   : > { %816 = vmatprep.subr.bf16.mxu1 %v915_v0 }
  0x41   : > { %797 = vmatpush3.bf16.msra.mxu0 %v796_v19 }
  0x42   : > { %798 = vmatprep.subr.bf16.mxu0 %v915_v0 }
  0x43   : > { %818 = vmatpush3.bf16.msra.mxu1 %v817_v41  ;;  %v656_v41 = vld [vmem:[#allocation2 + $0x1] ss:$0 sm:$0xff] }
  0x44   : > { %819 = vmatprep.subr.bf16.mxu1 %v915_v0 }
  0x45   : > { %800 = vmatpush3.bf16.msra.mxu0 %v799_v22 }
  0x46   : > { %801 = vmatprep.subr.bf16.mxu0 %v915_v0 }
  0x47   : > { %821 = vmatpush3.bf16.msra.mxu1 %v820_v44 }
  0x48   : > { %822 = vmatprep.subr.bf16.mxu1 %v915_v0 }
  0x49   : > { %803 = vmatpush3.bf16.msra.mxu0 %v802_v25 }
  0x4b   : > { %824 = vmatpush3.bf16.msra.mxu1 %v823_v47 }
  0x4c   : > { %731 = vmatmul.mubr.f32.vlgmr.msra.gmra.mrb[0].mxu0 %v999_v26  ;;  %825 = vmatprep.subr.bf16.mxu1 %v915_v0 }
  0x4d   : > { %733 = vmatprep.mubr.msk.f32.mxu0 %vm916_vm0, %v917_v1 }
  0x4f   : > { %827 = vmatpush3.bf16.msra.mxu1 %v826_v50 }
  0x50   : > { %734 = vmatmul.mubr.f32.gmra.mrb[2].mxu0 %v999_v26 }
  0x51   : > { %736 = vmatprep.mubr.msk.f32.mxu0 %vm916_vm0, %v917_v1 }
  0x54   : > { %737 = vmatmul.mubr.f32.gmra.mrb[4].mxu0 %v917_v1 }
 0x11f   : > { %v252_v52 = vpop.f32.mrb[0].mxu0 }
 0x120   : > { %v270_v53 = vadd.f32 %v654_v51, %v252_v52  ;;  %v732_v54 = vpop.f32.mrb[1].mxu0 }
 0x122   : > { %v276_v55 = vmul.f32 225.0, %v270_v53 }
 0x123   : > { %v257_v56 = vpop.f32.mrb[2].mxu0 }
 0x124   : > { %v279_v57 = vmin.f32 %v276_v55, 20.0  ;;  %v735_v58 = vpop.f32.mrb[3].mxu0  ;;  %vm288_vm2 = vcmp.gt.f32.partialorder %v276_v55, 20.0 }
 0x126   : > { %v282_v59 = vmul.f32 1.442695, %v279_v57 }
 0x127   : > { %v262_v60 = vpop.f32.mrb[4].mxu0 }
 0x128   : > { %852 = vpow2.f32 %v282_v59  ;;  %v272_v61 = vadd.f32 %v654_v51, %v262_v60  ;;  %v738_v62 = vpop.f32.mrb[5].mxu0 }
 0x12a   : > { %v278_v63 = vmul.f32 225.0, %v272_v61 }
 0x12c   : > { %v281_v2 = vmin.f32 %v278_v63, 20.0  ;;  %vm290_vm5 = vcmp.gt.f32.partialorder %v278_v63, 20.0 }
 0x12e   : > { %v286_v0 = vmul.f32 1.442695, %v281_v2 }
 0x130   : > { %854 = vpow2.f32 %v286_v0 }
 0x132   : > { %v853_v3 = vpop.eup %852 }
 0x133   : > { %v291_v4 = vadd.f32 1.0, %v853_v3  ;;  %v294_v5 = vmul.f32 -0.5, %v853_v3  ;;  %v297_v9 = vand.u32 2147483647, %v853_v3 }
 0x135   : > { %856 = vlog2.f32 %v291_v4  ;;  %v295_v8 = vadd.f32 1.0, %v294_v5  ;;  %vm298_vm1 = vcmp.lt.f32.partialorder %v297_v9, 0.0004427343 }
 0x137   : > { %v296_v13 = vmul.f32 %v853_v3, %v295_v8 }
 0x13a   : > { %v855_v6 = vpop.eup %854 }
 0x13b   : > { %v309_v7 = vadd.f32 1.0, %v855_v6  ;;  %v312_v14 = vmul.f32 -0.5, %v855_v6  ;;  %v315_v20 = vand.u32 2147483647, %v855_v6 }
 0x13d   : > { %858 = vlog2.f32 %v309_v7  ;;  %v313_v18 = vadd.f32 1.0, %v312_v14  ;;  %vm316_vm4 = vcmp.lt.f32.partialorder %v315_v20, 0.0004427343 }
 0x13e   : > { %860 = vrcp.f32 %v309_v7  ;;  %v657_v7 = vld [vmem:[#allocation2 + $0x2] ss:$0 sm:$0xff] }
 0x13f   : > { %v857_v11 = vpop.eup %856  ;;  %v314_v25 = vmul.f32 %v855_v6, %v313_v18 }
 0x140   : > { %v293_v12 = vmul.f32 0.6931472, %v857_v11 }
 0x142   : > { %v299_v16 = vsel %vm298_vm1, %v296_v13, %v293_v12 }
 0x143   : > { %v318_v17 = vmul.f32 0.0044444446, %v299_v16 }
 0x145   : > { %v321_v19 = vsel %vm288_vm2, %v270_v53, %v318_v17 }
 0x146   : > { %v324_v21 = vmul.f32 %v321_v19, %v321_v19 }
 0x147   : > { %v859_v22 = vpop.eup %858 }
 0x148   : > { %v861_v23 = vpop.eup %860  ;;  %v311_v24 = vmul.f32 0.6931472, %v859_v22  ;;  %v343_v27 = vsel %vm168_vm3, %v324_v21, %v999_v26 }
 0x149   : > { %772 = vmatmul.mubr.f32.vlgmr.msra.gmra.mrb[0].mxu1 %v343_v27  ;;  %v329_v31 = vmul.f32 %v861_v23, %v855_v6 }
 0x14a   : > { %v317_v28 = vsel %vm316_vm4, %v314_v25, %v311_v24  ;;  %774 = vmatprep.mubr.msk.f32.mxu1 %vm916_vm0, %v917_v1 }
 0x14b   : > { %v320_v30 = vmul.f32 0.0044444446, %v317_v28  ;;  %v330_v35 = vsel %vm290_vm5, 1.0, %v329_v31 }
 0x14d   : > { %v323_v32 = vsel %vm290_vm5, %v272_v61, %v320_v30 }
 0x14e   : > { %v331_v33 = vmul.f32 2.0, %v323_v32  ;;  %v326_v40 = vmul.f32 %v323_v32, %v323_v32 }
 0x150   : > { %v332_v36 = vmul.f32 %v331_v33, %v330_v35 }
 0x152   : > { %v336_v37 = vrot.slane %v332_v36, %v335_v34  ;;  %v156_v36 = vadd.s32 16, %v1023_v29 }
 0x154   : > { %v338_v38 = vmul.f32 %v336_v37, %v257_v56  ;;  %v549_v37 = vadd.s32 8, %v1015_v15  ;;  %vm542_vm11 = vcmp.eq.s32.totalorder %v156_v36, %v1015_v15 }
 0x155   : > { %vm545_vm14 = vmand %vm542_vm11, %vm539_vm13 }
 0x156   : > { %v344_v39 = vsel %vm168_vm3, %v338_v38, %v999_v26  ;;  %vm552_vm12 = vcmp.eq.s32.totalorder %v156_v36, %v549_v37  ;;  %v155_v38 = vadd.s32 8, %v1023_v29 }
 0x157   : > { %775 = vmatmul.mubr.f32.gmra.mrb[2].mxu1 %v344_v39  ;;  %vm555_vm15 = vmand %vm552_vm12, %vm539_vm13 }
 0x158   : > { %777 = vmatprep.mubr.msk.f32.mxu1 %vm916_vm0, %v917_v1  ;;  %vm564_vm0 = vcmp.eq.s32.totalorder %v156_v36, 16  ;;  %vm541_vm1 = vcmp.eq.s32.totalorder %v155_v38, %v1015_v15  ;;  %vm551_vm2 = vcmp.eq.s32.totalorder %v155_v38, %v549_v37 }
 0x159   : > { %vm544_vm4 = vmand %vm541_vm1, %vm539_vm13 }
 0x15a   : > { %vm554_vm5 = vmand %vm551_vm2, %vm539_vm13 }
 0x15b   : > { %778 = vmatmul.mubr.msk.f32.gmra.mrb[4].mxu1 %vm168_vm3, %v326_v40 }
 0x21c   : > { %v429_v42 = vpop.f32.mrb[0].mxu1 }
 0x21d   : > { %v447_v43 = vadd.f32 %v656_v41, %v429_v42  ;;  %v773_v44 = vpop.f32.mrb[1].mxu1  ;;  %v557_v42 = vsel %vm554_vm5, 1.0, %v917_v1 }
 0x21f   : > { %v453_v45 = vmul.f32 225.0, %v447_v43 }
 0x221   : > { %v456_v46 = vmin.f32 %v453_v45, 20.0  ;;  %vm465_vm7 = vcmp.gt.f32.partialorder %v453_v45, 20.0 }
 0x223   : > { %v459_v47 = vmul.f32 1.442695, %v456_v46 }
 0x225   : > { %862 = vpow2.f32 %v459_v47 }
 0x22a   : > { %v434_v48 = vpop.f32.mrb[2].mxu1 }
 0x22b   : > { %v776_v49 = vpop.f32.mrb[3].mxu1 }
 0x22e   : > { %v439_v50 = vpop.f32.mrb[4].mxu1 }
 0x22f   : > { %v863_v51 = vpop.eup %862  ;;  %v449_v52 = vadd.f32 %v656_v41, %v439_v50  ;;  %v779_v53 = vpop.f32.mrb[5].mxu1  ;;  %v547_v41 = vsel %vm544_vm4, 1.0, %v917_v1 }
 0x230   : > { %v468_v54 = vadd.f32 1.0, %v863_v51  ;;  %v471_v57 = vmul.f32 -0.5, %v863_v51  ;;  %v474_v60 = vand.u32 2147483647, %v863_v51  ;;  %v560_v46 = vsub.f32 %v547_v41, %v557_v42 }
 0x231   : > { %v455_v55 = vmul.f32 225.0, %v449_v52 }
 0x232   : > { %864 = vlog2.f32 %v468_v54  ;;  %v472_v59 = vadd.f32 1.0, %v471_v57  ;;  %vm475_vm6 = vcmp.lt.f32.partialorder %v474_v60, 0.0004427343 }
 0x233   : > { %v458_v56 = vmin.f32 %v455_v55, 20.0  ;;  %vm467_vm9 = vcmp.gt.f32.partialorder %v455_v55, 20.0 }
 0x234   : > { %v473_v63 = vmul.f32 %v863_v51, %v472_v59 }
 0x235   : > { %v463_v58 = vmul.f32 1.442695, %v458_v56 }
 0x237   : > { %866 = vpow2.f32 %v463_v58 }
 0x23c   : > { %v865_v61 = vpop.eup %864 }
 0x23d   : > { %v470_v62 = vmul.f32 0.6931472, %v865_v61 }
 0x23f   : > { %v476_v2 = vsel %vm475_vm6, %v473_v63, %v470_v62  ;;  %vm540_vm6 = vcmp.eq.s32.totalorder %v1023_v29, %v1015_v15 }
 0x240   : > { %v495_v0 = vmul.f32 0.0044444446, %v476_v2 }
 0x241   : > { %v867_v3 = vpop.eup %866 }
 0x242   : > { %v498_v4 = vsel %vm465_vm7, %v447_v43, %v495_v0  ;;  %v486_v5 = vadd.f32 1.0, %v867_v3  ;;  %v489_v10 = vmul.f32 -0.5, %v867_v3  ;;  %v492_v12 = vand.u32 2147483647, %v867_v3  ;;  %vm543_vm7 = vmand %vm540_vm6, %vm539_vm13 }
 0x243   : > { %v501_v6 = vmul.f32 %v498_v4, %v498_v4  ;;  %v546_v47 = vsel %vm543_vm7, 1.0, %v917_v1 }
 0x244   : > { %868 = vlog2.f32 %v486_v5  ;;  %v490_v11 = vadd.f32 1.0, %v489_v10  ;;  %vm493_vm8 = vcmp.lt.f32.partialorder %v492_v12, 0.0004427343 }
 0x245   : > { %870 = vrcp.f32 %v486_v5  ;;  %v520_v8 = vsel %vm168_vm3, %v501_v6, %v999_v26 }
 0x246   : > { %v528_v9 = vmul.f32 %v657_v7, %v520_v8  ;;  %v491_v17 = vmul.f32 %v867_v3, %v490_v11 }
 0x248   : > { %531 = vadd.xlane.f32.xlu0 %v528_v9 }
 0x24e   : > { %v869_v13 = vpop.eup %868 }
 0x24f   : > { %v871_v14 = vpop.eup %870  ;;  %v488_v16 = vmul.f32 0.6931472, %v869_v13 }
 0x250   : > { %v506_v20 = vmul.f32 %v871_v14, %v867_v3 }
 0x251   : > { %v494_v18 = vsel %vm493_vm8, %v491_v17, %v488_v16 }
 0x252   : > { %v497_v19 = vmul.f32 0.0044444446, %v494_v18  ;;  %v507_v24 = vsel %vm467_vm9, 1.0, %v506_v20 }
 0x254   : > { %v500_v21 = vsel %vm467_vm9, %v449_v52, %v497_v19 }
 0x255   : > { %v508_v22 = vmul.f32 2.0, %v500_v21  ;;  %v503_v23 = vmul.f32 %v500_v21, %v500_v21 }
 0x257   : > { %v509_v25 = vmul.f32 %v508_v22, %v507_v24  ;;  %v522_v27 = vsel %vm168_vm3, %v503_v23, 0.0 }
 0x258   : > { %v530_v28 = vmul.f32 %v657_v7, %v522_v27 }
 0x259   : > { %v513_v30 = vrot.slane %v509_v25, %v335_v34  ;;  %v558_v34 = vsel %vm555_vm15, 1.0, %v917_v1 }
 0x25a   : > { %v536_v31 = vsel %vm535_vm10, %v530_v28, 0.0 }
 0x25b   : > { %537 = vadd.xlane.f32.xlu1 %v536_v31  ;;  %v515_v32 = vmul.f32 %v513_v30, %v434_v48 }
 0x25d   : > { %v521_v33 = vsel %vm168_vm3, %v515_v32, %v999_v26  ;;  %v548_v26 = vsel %vm545_vm14, 1.0, %v917_v1  ;;  %vm567_vm3 = vmand %vm564_vm0, %vm539_vm13 }
 0x25e   : > { %v529_v35 = vmul.f32 %v657_v7, %v521_v33  ;;  %v561_v39 = vsub.f32 %v548_v26, %v558_v34  ;;  %v570_v40 = vsel %vm567_vm3, 1.0, %v917_v1 }
 0x260   : > { %533 = vadd.xlane.f32.xlu0 %v529_v35  ;;  %v573_v44 = vsub.f32 %v561_v39, %v570_v40 }
 0x2d5   : > { %v532_v43 = vpop.xlane.xlu0 %531 }
 0x2d6   : > { %v574_v29 = vmul.f32 %v546_v47, %v532_v43 }
 0x2e8   : > { %v538_v45 = vpop.xlane.xlu1 %537 }
 0x2e9   : > { %v576_v48 = vmul.f32 %v573_v44, %v538_v45 }
 0x2eb   : > { %v578_v52 = vsel %vm535_vm10, %v576_v48, 0.0 }
 0x2ed   : > { %v534_v49 = vpop.xlane.xlu0 %533 }
 0x2ee   : > { %v575_v50 = vmul.f32 %v560_v46, %v534_v49 }
 0x2f0   : > { %v577_v51 = vadd.f32 %v575_v50, %v574_v29 }
 0x2f2   : > { %v579_v53 = vadd.f32 %v578_v52, %v577_v51 }
 0x2f4   : > { %v580_v54 = vrot.slane %v579_v53, 4 }
 0x2f6   : > { %v581_v55 = vadd.f32 %v580_v54, %v579_v53 }
 0x2f8   : > { %v582_v56 = vrot.slane %v581_v55, 2 }
 0x2fa   : > { %v583_v15 = vadd.f32 %v582_v56, %v581_v55 }
 0x2fc   : > { %v584_v57 = vrot.slane %v583_v15, 1 }
 0x2fe   : > { %v585_v58 = vadd.f32 %v584_v57, %v583_v15 }
 0x300   : > { %586 = vst [vmem:[%s151_s5] sm:$0x1] %v585_v58 }
 0x301 PF: > { %s13_s9 = sadd.s32 1, %s910_s9  }
 0x302   : > { %p10_p3 = scmp.ge.s32.totalorder %s13_s9, 4  }
 0x304   :  { %12 = sbr.rel (!%p10_p3) target bundleno = 1 (0x1), region = 63 }
 0x30b   :  { %604 = vsyncpa [#allocation3], 1 }
 0x30c   :  { %606 = vsyncpa [#allocation3 + $0x1], 1 }

</bundles_post_ra>
